<compile_context>
chip_gen: v5e
topology: v5e:2x2
jax: 0.10.0
libtpu: 0.0.40
codegen_flags: <defaults>
</compile_context>

<pallas_src>
import jax
import jax.numpy as jnp
from jax.experimental import pallas as pl
from jax.experimental.pallas import tpu as pltpu

N_IN = 10
N_HID = 5

# Packed-parameter layout inside the f32[64] SMEM vector:
#   [0:50)  w1 (stored (in=10, out=5), row-major: index i*5 + j)
#   [50:55) b1
#   [55:60) w2 (the 5-vector of the (5 -> 1) layer)
#   [60]    b2
#   [61:64) zero padding
_W1_OFF, _B1_OFF, _W2_OFF, _B2_OFF = 0, 50, 55, 60


def mlp_kernel(params_ref, x_ref, o_ref):
    # params_ref : f32[64] in SMEM (all weights/biases as scalars)
    # x_ref      : (10, TB) in VMEM -- batch along the lane axis
    # o_ref      : (1, TB)  in VMEM -- lane-dense output row
    tb = o_ref.shape[-1]

    # Load each input-feature row once (upcast to f32 in case x arrives as bf16),
    # reuse it for all 5 hidden units.
    xrows = [x_ref[i:i + 1, :].astype(jnp.float32) for i in range(N_IN)]

    # Layer 2 accumulator starts at b2.
    y = jnp.full((1, tb), params_ref[_B2_OFF], dtype=jnp.float32)

    # Pure-VPU MLP: 50 scalar-broadcast FMAs (layer 1) + ReLU + 5 FMAs (layer 2).
    for j in range(N_HID):
        h = jnp.full((1, tb), params_ref[_B1_OFF + j], dtype=jnp.float32)
        for i in range(N_IN):
            h = h + params_ref[_W1_OFF + i * N_HID + j] * xrows[i]
        y = y + params_ref[_W2_OFF + j] * jnp.maximum(h, 0.0)

    o_ref[...] = y.astype(o_ref.dtype)


def _round_up(n, m):
    return ((n + m - 1) // m) * m


def simple_model_forward(x, w1, b1, w2, b2, *, max_block=65536, x_in_bf16=False):
    """Forward pass of SimpleModel.

    x : (B, 10) f32 (PyTorch layout).  Returns (B, 1) f32.
    w1: (10, 5) (pre-transposed), b1: (5,), w2: (5,), b2: (1,).
    """
    B, f_in = x.shape
    assert f_in == N_IN
    assert max_block % 128 == 0

    # --- pack the 61 parameter scalars into one small resident SMEM operand -------
    params = jnp.concatenate([
        w1.reshape(-1).astype(jnp.float32),
        b1.reshape(-1).astype(jnp.float32),
        w2.reshape(-1).astype(jnp.float32),
        b2.reshape(-1).astype(jnp.float32),
        jnp.zeros((3,), jnp.float32),
    ])  # f32[64]

    # --- batch tile (lane axis after the transpose) --------------------------------
    if B <= max_block:
        tb, b_pad = B, B          # single block == full array dim: always legal
    else:
        tb = max_block            # multiple of 128 -> legal lane block size
        b_pad = _round_up(B, tb)

    # Batch -> lane axis.  This transpose is the one relayout pass we pay for; any
    # tail padding is folded into it (never a second standalone copy of x).
    xt = x.T                                           # (10, B)
    if b_pad != B:
        xt = jnp.pad(xt, ((0, 0), (0, b_pad - B)))     # (10, b_pad)
    if x_in_bf16:
        xt = xt.astype(jnp.bfloat16)                   # halves the dominant HBM read

    grid = (b_pad // tb,)

    # --- accurate VMEM budget (double-buffered x block + out block + slack) --------
    lanes = max(_round_up(tb, 128), 128)
    x_blk_bytes = 16 * lanes * jnp.dtype(xt.dtype).itemsize   # 10 sublanes pad to 16
    o_blk_bytes = 8 * lanes * 4                               # 1 sublane pads to 8
    vmem_limit = int(min(2 * (x_blk_bytes + o_blk_bytes) + (8 << 20), 32 << 20))

    out = pl.pallas_call(
        mlp_kernel,
        out_shape=jax.ShapeDtypeStruct((1, b_pad), jnp.float32),
        grid=grid,
        in_specs=[
            # all params as scalars, resident in SMEM for the whole call
            pl.BlockSpec(memory_space=pltpu.MemorySpace.SMEM),
            # x^T tiled along the lane (batch) axis
            pl.BlockSpec((N_IN, tb), lambda i: (0, i)),
        ],
        # lane-dense output row: unmasked vst, minimal writeback traffic
        out_specs=pl.BlockSpec((1, tb), lambda i: (0, i)),
        compiler_params=pltpu.CompilerParams(
            dimension_semantics=("parallel",),
            vmem_limit_bytes=vmem_limit,
        ),
    )(params, xt)

    # Return (B, 1) to match the PyTorch module's output shape.
    return out[0, :B].reshape(B, 1)


def init_params(key):
    # Deterministic init mimicking nn.Linear's uniform(-1/sqrt(fan_in), 1/sqrt(fan_in)).
    k1, k2, k3, k4 = jax.random.split(key, 4)
    bound1 = 1.0 / jnp.sqrt(10.0)
    bound2 = 1.0 / jnp.sqrt(5.0)
    # w1 stored as (in, out) so the math is x @ w1 (PyTorch stores (out, in), does x @ W^T)
    w1 = jax.random.uniform(k1, (N_IN, N_HID), jnp.float32, -bound1, bound1)
    b1 = jax.random.uniform(k2, (N_HID,), jnp.float32, -bound1, bound1)
    w2 = jax.random.uniform(k3, (N_HID,), jnp.float32, -bound2, bound2)
    b2 = jax.random.uniform(k4, (1,), jnp.float32, -bound2, bound2)
    return w1, b1, w2, b2


def _ref_forward(x, w1, b1, w2, b2):
    h = jnp.maximum(x @ w1 + b1, 0.0)
    return h @ w2.reshape(N_HID, 1) + b2.reshape(1, 1)


if __name__ == "__main__":
    key = jax.random.PRNGKey(0)
    pkey, xkey, xkey2 = jax.random.split(key, 3)
    w1, b1, w2, b2 = init_params(pkey)

    # Small batch: single lane block (block dim == full array dim path).
    B = 8
    x = jax.random.normal(xkey, (B, N_IN), jnp.float32)
    out = simple_model_forward(x, w1, b1, w2, b2)
    jax.block_until_ready(out)
    ref = _ref_forward(x, w1, b1, w2, b2)
    assert out.shape == (B, 1)
    assert jnp.allclose(out, ref, atol=1e-5, rtol=1e-5)

    # Larger, non-multiple batch: multi-step grid with padded tail tile.
    B2 = 300
    x2 = jax.random.normal(xkey2, (B2, N_IN), jnp.float32)
    out2 = simple_model_forward(x2, w1, b1, w2, b2, max_block=128)
    jax.block_until_ready(out2)
    ref2 = _ref_forward(x2, w1, b1, w2, b2)
    assert out2.shape == (B2, 1)
    assert jnp.allclose(out2, ref2, atol=1e-5, rtol=1e-5)

    # bf16-input variant: halves the dominant HBM read; params/accumulation stay f32.
    out3 = simple_model_forward(x2, w1, b1, w2, b2, max_block=128, x_in_bf16=True)
    jax.block_until_ready(out3)
    assert out3.shape == (B2, 1)
    assert jnp.allclose(out3, ref2, atol=5e-2, rtol=5e-2)

    print("KERNEL_OK")
</pallas_src>

<mosaic_0001>
module attributes {stable_mosaic.version = 11 : i64} {
  func.func @mlp_kernel(%arg0: i32, %arg1: memref<64xf32, #tpu.memory_space<smem>>, %arg2: memref<10x8xf32, #tpu.memory_space<vmem>>, %arg3: memref<1x8xf32, #tpu.memory_space<vmem>>) attributes {dimension_semantics = [#tpu.dimension_semantics<parallel>], iteration_bounds = array<i64: 1>, scalar_prefetch = 0 : i64, scratch_operands = 0 : i64, tpu.core_type = #tpu.core_type<tc>, window_params = [{transform_indices = @transform_0, window_bounds = array<i64: 64>}, {transform_indices = @transform_1, window_bounds = array<i64: 10, 8>}, {transform_indices = @transform_2, window_bounds = array<i64: 1, 8>}]} {
    %c0 = arith.constant 0 : index
    %c0_0 = arith.constant 0 : index
    %0 = vector.load %arg2[%c0, %c0_0] : memref<10x8xf32, #tpu.memory_space<vmem>>, vector<1x8xf32>
    %c1 = arith.constant 1 : index
    %c0_1 = arith.constant 0 : index
    %1 = vector.load %arg2[%c1, %c0_1] : memref<10x8xf32, #tpu.memory_space<vmem>>, vector<1x8xf32>
    %c2 = arith.constant 2 : index
    %c0_2 = arith.constant 0 : index
    %2 = vector.load %arg2[%c2, %c0_2] : memref<10x8xf32, #tpu.memory_space<vmem>>, vector<1x8xf32>
    %c3 = arith.constant 3 : index
    %c0_3 = arith.constant 0 : index
    %3 = vector.load %arg2[%c3, %c0_3] : memref<10x8xf32, #tpu.memory_space<vmem>>, vector<1x8xf32>
    %c4 = arith.constant 4 : index
    %c0_4 = arith.constant 0 : index
    %4 = vector.load %arg2[%c4, %c0_4] : memref<10x8xf32, #tpu.memory_space<vmem>>, vector<1x8xf32>
    %c5 = arith.constant 5 : index
    %c0_5 = arith.constant 0 : index
    %5 = vector.load %arg2[%c5, %c0_5] : memref<10x8xf32, #tpu.memory_space<vmem>>, vector<1x8xf32>
    %c6 = arith.constant 6 : index
    %c0_6 = arith.constant 0 : index
    %6 = vector.load %arg2[%c6, %c0_6] : memref<10x8xf32, #tpu.memory_space<vmem>>, vector<1x8xf32>
    %c7 = arith.constant 7 : index
    %c0_7 = arith.constant 0 : index
    %7 = vector.load %arg2[%c7, %c0_7] : memref<10x8xf32, #tpu.memory_space<vmem>>, vector<1x8xf32>
    %c8 = arith.constant 8 : index
    %c0_8 = arith.constant 0 : index
    %8 = vector.load %arg2[%c8, %c0_8] : memref<10x8xf32, #tpu.memory_space<vmem>>, vector<1x8xf32>
    %c9 = arith.constant 9 : index
    %c0_9 = arith.constant 0 : index
    %9 = vector.load %arg2[%c9, %c0_9] : memref<10x8xf32, #tpu.memory_space<vmem>>, vector<1x8xf32>
    %c60 = arith.constant 60 : index
    %10 = memref.load %arg1[%c60] : memref<64xf32, #tpu.memory_space<smem>>
    %11 = vector.broadcast %10 : f32 to vector<1x8xf32>
    %c50 = arith.constant 50 : index
    %12 = memref.load %arg1[%c50] : memref<64xf32, #tpu.memory_space<smem>>
    %13 = vector.broadcast %12 : f32 to vector<1x8xf32>
    %c0_10 = arith.constant 0 : index
    %14 = memref.load %arg1[%c0_10] : memref<64xf32, #tpu.memory_space<smem>>
    %15 = vector.broadcast %14 : f32 to vector<1x8xf32>
    %16 = arith.mulf %15, %0 : vector<1x8xf32>
    %17 = arith.addf %13, %16 : vector<1x8xf32>
    %c5_11 = arith.constant 5 : index
    %18 = memref.load %arg1[%c5_11] : memref<64xf32, #tpu.memory_space<smem>>
    %19 = vector.broadcast %18 : f32 to vector<1x8xf32>
    %20 = arith.mulf %19, %1 : vector<1x8xf32>
    %21 = arith.addf %17, %20 : vector<1x8xf32>
    %c10 = arith.constant 10 : index
    %22 = memref.load %arg1[%c10] : memref<64xf32, #tpu.memory_space<smem>>
    %23 = vector.broadcast %22 : f32 to vector<1x8xf32>
    %24 = arith.mulf %23, %2 : vector<1x8xf32>
    %25 = arith.addf %21, %24 : vector<1x8xf32>
    %c15 = arith.constant 15 : index
    %26 = memref.load %arg1[%c15] : memref<64xf32, #tpu.memory_space<smem>>
    %27 = vector.broadcast %26 : f32 to vector<1x8xf32>
    %28 = arith.mulf %27, %3 : vector<1x8xf32>
    %29 = arith.addf %25, %28 : vector<1x8xf32>
    %c20 = arith.constant 20 : index
    %30 = memref.load %arg1[%c20] : memref<64xf32, #tpu.memory_space<smem>>
    %31 = vector.broadcast %30 : f32 to vector<1x8xf32>
    %32 = arith.mulf %31, %4 : vector<1x8xf32>
    %33 = arith.addf %29, %32 : vector<1x8xf32>
    %c25 = arith.constant 25 : index
    %34 = memref.load %arg1[%c25] : memref<64xf32, #tpu.memory_space<smem>>
    %35 = vector.broadcast %34 : f32 to vector<1x8xf32>
    %36 = arith.mulf %35, %5 : vector<1x8xf32>
    %37 = arith.addf %33, %36 : vector<1x8xf32>
    %c30 = arith.constant 30 : index
    %38 = memref.load %arg1[%c30] : memref<64xf32, #tpu.memory_space<smem>>
    %39 = vector.broadcast %38 : f32 to vector<1x8xf32>
    %40 = arith.mulf %39, %6 : vector<1x8xf32>
    %41 = arith.addf %37, %40 : vector<1x8xf32>
    %c35 = arith.constant 35 : index
    %42 = memref.load %arg1[%c35] : memref<64xf32, #tpu.memory_space<smem>>
    %43 = vector.broadcast %42 : f32 to vector<1x8xf32>
    %44 = arith.mulf %43, %7 : vector<1x8xf32>
    %45 = arith.addf %41, %44 : vector<1x8xf32>
    %c40 = arith.constant 40 : index
    %46 = memref.load %arg1[%c40] : memref<64xf32, #tpu.memory_space<smem>>
    %47 = vector.broadcast %46 : f32 to vector<1x8xf32>
    %48 = arith.mulf %47, %8 : vector<1x8xf32>
    %49 = arith.addf %45, %48 : vector<1x8xf32>
    %c45 = arith.constant 45 : index
    %50 = memref.load %arg1[%c45] : memref<64xf32, #tpu.memory_space<smem>>
    %51 = vector.broadcast %50 : f32 to vector<1x8xf32>
    %52 = arith.mulf %51, %9 : vector<1x8xf32>
    %53 = arith.addf %49, %52 : vector<1x8xf32>
    %c55 = arith.constant 55 : index
    %54 = memref.load %arg1[%c55] : memref<64xf32, #tpu.memory_space<smem>>
    %cst = arith.constant 0.000000e+00 : f32
    %55 = vector.broadcast %cst : f32 to vector<1x8xf32>
    %56 = arith.maximumf %53, %55 : vector<1x8xf32>
    %57 = vector.broadcast %54 : f32 to vector<1x8xf32>
    %58 = arith.mulf %57, %56 : vector<1x8xf32>
    %59 = arith.addf %11, %58 : vector<1x8xf32>
    %c51 = arith.constant 51 : index
    %60 = memref.load %arg1[%c51] : memref<64xf32, #tpu.memory_space<smem>>
    %61 = vector.broadcast %60 : f32 to vector<1x8xf32>
    %c1_12 = arith.constant 1 : index
    %62 = memref.load %arg1[%c1_12] : memref<64xf32, #tpu.memory_space<smem>>
    %63 = vector.broadcast %62 : f32 to vector<1x8xf32>
    %64 = arith.mulf %63, %0 : vector<1x8xf32>
    %65 = arith.addf %61, %64 : vector<1x8xf32>
    %c6_13 = arith.constant 6 : index
    %66 = memref.load %arg1[%c6_13] : memref<64xf32, #tpu.memory_space<smem>>
    %67 = vector.broadcast %66 : f32 to vector<1x8xf32>
    %68 = arith.mulf %67, %1 : vector<1x8xf32>
    %69 = arith.addf %65, %68 : vector<1x8xf32>
    %c11 = arith.constant 11 : index
    %70 = memref.load %arg1[%c11] : memref<64xf32, #tpu.memory_space<smem>>
    %71 = vector.broadcast %70 : f32 to vector<1x8xf32>
    %72 = arith.mulf %71, %2 : vector<1x8xf32>
    %73 = arith.addf %69, %72 : vector<1x8xf32>
    %c16 = arith.constant 16 : index
    %74 = memref.load %arg1[%c16] : memref<64xf32, #tpu.memory_space<smem>>
    %75 = vector.broadcast %74 : f32 to vector<1x8xf32>
    %76 = arith.mulf %75, %3 : vector<1x8xf32>
    %77 = arith.addf %73, %76 : vector<1x8xf32>
    %c21 = arith.constant 21 : index
    %78 = memref.load %arg1[%c21] : memref<64xf32, #tpu.memory_space<smem>>
    %79 = vector.broadcast %78 : f32 to vector<1x8xf32>
    %80 = arith.mulf %79, %4 : vector<1x8xf32>
    %81 = arith.addf %77, %80 : vector<1x8xf32>
    %c26 = arith.constant 26 : index
    %82 = memref.load %arg1[%c26] : memref<64xf32, #tpu.memory_space<smem>>
    %83 = vector.broadcast %82 : f32 to vector<1x8xf32>
    %84 = arith.mulf %83, %5 : vector<1x8xf32>
    %85 = arith.addf %81, %84 : vector<1x8xf32>
    %c31 = arith.constant 31 : index
    %86 = memref.load %arg1[%c31] : memref<64xf32, #tpu.memory_space<smem>>
    %87 = vector.broadcast %86 : f32 to vector<1x8xf32>
    %88 = arith.mulf %87, %6 : vector<1x8xf32>
    %89 = arith.addf %85, %88 : vector<1x8xf32>
    %c36 = arith.constant 36 : index
    %90 = memref.load %arg1[%c36] : memref<64xf32, #tpu.memory_space<smem>>
    %91 = vector.broadcast %90 : f32 to vector<1x8xf32>
    %92 = arith.mulf %91, %7 : vector<1x8xf32>
    %93 = arith.addf %89, %92 : vector<1x8xf32>
    %c41 = arith.constant 41 : index
    %94 = memref.load %arg1[%c41] : memref<64xf32, #tpu.memory_space<smem>>
    %95 = vector.broadcast %94 : f32 to vector<1x8xf32>
    %96 = arith.mulf %95, %8 : vector<1x8xf32>
    %97 = arith.addf %93, %96 : vector<1x8xf32>
    %c46 = arith.constant 46 : index
    %98 = memref.load %arg1[%c46] : memref<64xf32, #tpu.memory_space<smem>>
    %99 = vector.broadcast %98 : f32 to vector<1x8xf32>
    %100 = arith.mulf %99, %9 : vector<1x8xf32>
    %101 = arith.addf %97, %100 : vector<1x8xf32>
    %c56 = arith.constant 56 : index
    %102 = memref.load %arg1[%c56] : memref<64xf32, #tpu.memory_space<smem>>
    %cst_14 = arith.constant 0.000000e+00 : f32
    %103 = vector.broadcast %cst_14 : f32 to vector<1x8xf32>
    %104 = arith.maximumf %101, %103 : vector<1x8xf32>
    %105 = vector.broadcast %102 : f32 to vector<1x8xf32>
    %106 = arith.mulf %105, %104 : vector<1x8xf32>
    %107 = arith.addf %59, %106 : vector<1x8xf32>
    %c52 = arith.constant 52 : index
    %108 = memref.load %arg1[%c52] : memref<64xf32, #tpu.memory_space<smem>>
    %109 = vector.broadcast %108 : f32 to vector<1x8xf32>
    %c2_15 = arith.constant 2 : index
    %110 = memref.load %arg1[%c2_15] : memref<64xf32, #tpu.memory_space<smem>>
    %111 = vector.broadcast %110 : f32 to vector<1x8xf32>
    %112 = arith.mulf %111, %0 : vector<1x8xf32>
    %113 = arith.addf %109, %112 : vector<1x8xf32>
    %c7_16 = arith.constant 7 : index
    %114 = memref.load %arg1[%c7_16] : memref<64xf32, #tpu.memory_space<smem>>
    %115 = vector.broadcast %114 : f32 to vector<1x8xf32>
    %116 = arith.mulf %115, %1 : vector<1x8xf32>
    %117 = arith.addf %113, %116 : vector<1x8xf32>
    %c12 = arith.constant 12 : index
    %118 = memref.load %arg1[%c12] : memref<64xf32, #tpu.memory_space<smem>>
    %119 = vector.broadcast %118 : f32 to vector<1x8xf32>
    %120 = arith.mulf %119, %2 : vector<1x8xf32>
    %121 = arith.addf %117, %120 : vector<1x8xf32>
    %c17 = arith.constant 17 : index
    %122 = memref.load %arg1[%c17] : memref<64xf32, #tpu.memory_space<smem>>
    %123 = vector.broadcast %122 : f32 to vector<1x8xf32>
    %124 = arith.mulf %123, %3 : vector<1x8xf32>
    %125 = arith.addf %121, %124 : vector<1x8xf32>
    %c22 = arith.constant 22 : index
    %126 = memref.load %arg1[%c22] : memref<64xf32, #tpu.memory_space<smem>>
    %127 = vector.broadcast %126 : f32 to vector<1x8xf32>
    %128 = arith.mulf %127, %4 : vector<1x8xf32>
    %129 = arith.addf %125, %128 : vector<1x8xf32>
    %c27 = arith.constant 27 : index
    %130 = memref.load %arg1[%c27] : memref<64xf32, #tpu.memory_space<smem>>
    %131 = vector.broadcast %130 : f32 to vector<1x8xf32>
    %132 = arith.mulf %131, %5 : vector<1x8xf32>
    %133 = arith.addf %129, %132 : vector<1x8xf32>
    %c32 = arith.constant 32 : index
    %134 = memref.load %arg1[%c32] : memref<64xf32, #tpu.memory_space<smem>>
    %135 = vector.broadcast %134 : f32 to vector<1x8xf32>
    %136 = arith.mulf %135, %6 : vector<1x8xf32>
    %137 = arith.addf %133, %136 : vector<1x8xf32>
    %c37 = arith.constant 37 : index
    %138 = memref.load %arg1[%c37] : memref<64xf32, #tpu.memory_space<smem>>
    %139 = vector.broadcast %138 : f32 to vector<1x8xf32>
    %140 = arith.mulf %139, %7 : vector<1x8xf32>
    %141 = arith.addf %137, %140 : vector<1x8xf32>
    %c42 = arith.constant 42 : index
    %142 = memref.load %arg1[%c42] : memref<64xf32, #tpu.memory_space<smem>>
    %143 = vector.broadcast %142 : f32 to vector<1x8xf32>
    %144 = arith.mulf %143, %8 : vector<1x8xf32>
    %145 = arith.addf %141, %144 : vector<1x8xf32>
    %c47 = arith.constant 47 : index
    %146 = memref.load %arg1[%c47] : memref<64xf32, #tpu.memory_space<smem>>
    %147 = vector.broadcast %146 : f32 to vector<1x8xf32>
    %148 = arith.mulf %147, %9 : vector<1x8xf32>
    %149 = arith.addf %145, %148 : vector<1x8xf32>
    %c57 = arith.constant 57 : index
    %150 = memref.load %arg1[%c57] : memref<64xf32, #tpu.memory_space<smem>>
    %cst_17 = arith.constant 0.000000e+00 : f32
    %151 = vector.broadcast %cst_17 : f32 to vector<1x8xf32>
    %152 = arith.maximumf %149, %151 : vector<1x8xf32>
    %153 = vector.broadcast %150 : f32 to vector<1x8xf32>
    %154 = arith.mulf %153, %152 : vector<1x8xf32>
    %155 = arith.addf %107, %154 : vector<1x8xf32>
    %c53 = arith.constant 53 : index
    %156 = memref.load %arg1[%c53] : memref<64xf32, #tpu.memory_space<smem>>
    %157 = vector.broadcast %156 : f32 to vector<1x8xf32>
    %c3_18 = arith.constant 3 : index
    %158 = memref.load %arg1[%c3_18] : memref<64xf32, #tpu.memory_space<smem>>
    %159 = vector.broadcast %158 : f32 to vector<1x8xf32>
    %160 = arith.mulf %159, %0 : vector<1x8xf32>
    %161 = arith.addf %157, %160 : vector<1x8xf32>
    %c8_19 = arith.constant 8 : index
    %162 = memref.load %arg1[%c8_19] : memref<64xf32, #tpu.memory_space<smem>>
    %163 = vector.broadcast %162 : f32 to vector<1x8xf32>
    %164 = arith.mulf %163, %1 : vector<1x8xf32>
    %165 = arith.addf %161, %164 : vector<1x8xf32>
    %c13 = arith.constant 13 : index
    %166 = memref.load %arg1[%c13] : memref<64xf32, #tpu.memory_space<smem>>
    %167 = vector.broadcast %166 : f32 to vector<1x8xf32>
    %168 = arith.mulf %167, %2 : vector<1x8xf32>
    %169 = arith.addf %165, %168 : vector<1x8xf32>
    %c18 = arith.constant 18 : index
    %170 = memref.load %arg1[%c18] : memref<64xf32, #tpu.memory_space<smem>>
    %171 = vector.broadcast %170 : f32 to vector<1x8xf32>
    %172 = arith.mulf %171, %3 : vector<1x8xf32>
    %173 = arith.addf %169, %172 : vector<1x8xf32>
    %c23 = arith.constant 23 : index
    %174 = memref.load %arg1[%c23] : memref<64xf32, #tpu.memory_space<smem>>
    %175 = vector.broadcast %174 : f32 to vector<1x8xf32>
    %176 = arith.mulf %175, %4 : vector<1x8xf32>
    %177 = arith.addf %173, %176 : vector<1x8xf32>
    %c28 = arith.constant 28 : index
    %178 = memref.load %arg1[%c28] : memref<64xf32, #tpu.memory_space<smem>>
    %179 = vector.broadcast %178 : f32 to vector<1x8xf32>
    %180 = arith.mulf %179, %5 : vector<1x8xf32>
    %181 = arith.addf %177, %180 : vector<1x8xf32>
    %c33 = arith.constant 33 : index
    %182 = memref.load %arg1[%c33] : memref<64xf32, #tpu.memory_space<smem>>
    %183 = vector.broadcast %182 : f32 to vector<1x8xf32>
    %184 = arith.mulf %183, %6 : vector<1x8xf32>
    %185 = arith.addf %181, %184 : vector<1x8xf32>
    %c38 = arith.constant 38 : index
    %186 = memref.load %arg1[%c38] : memref<64xf32, #tpu.memory_space<smem>>
    %187 = vector.broadcast %186 : f32 to vector<1x8xf32>
    %188 = arith.mulf %187, %7 : vector<1x8xf32>
    %189 = arith.addf %185, %188 : vector<1x8xf32>
    %c43 = arith.constant 43 : index
    %190 = memref.load %arg1[%c43] : memref<64xf32, #tpu.memory_space<smem>>
    %191 = vector.broadcast %190 : f32 to vector<1x8xf32>
    %192 = arith.mulf %191, %8 : vector<1x8xf32>
    %193 = arith.addf %189, %192 : vector<1x8xf32>
    %c48 = arith.constant 48 : index
    %194 = memref.load %arg1[%c48] : memref<64xf32, #tpu.memory_space<smem>>
    %195 = vector.broadcast %194 : f32 to vector<1x8xf32>
    %196 = arith.mulf %195, %9 : vector<1x8xf32>
    %197 = arith.addf %193, %196 : vector<1x8xf32>
    %c58 = arith.constant 58 : index
    %198 = memref.load %arg1[%c58] : memref<64xf32, #tpu.memory_space<smem>>
    %cst_20 = arith.constant 0.000000e+00 : f32
    %199 = vector.broadcast %cst_20 : f32 to vector<1x8xf32>
    %200 = arith.maximumf %197, %199 : vector<1x8xf32>
    %201 = vector.broadcast %198 : f32 to vector<1x8xf32>
    %202 = arith.mulf %201, %200 : vector<1x8xf32>
    %203 = arith.addf %155, %202 : vector<1x8xf32>
    %c54 = arith.constant 54 : index
    %204 = memref.load %arg1[%c54] : memref<64xf32, #tpu.memory_space<smem>>
    %205 = vector.broadcast %204 : f32 to vector<1x8xf32>
    %c4_21 = arith.constant 4 : index
    %206 = memref.load %arg1[%c4_21] : memref<64xf32, #tpu.memory_space<smem>>
    %207 = vector.broadcast %206 : f32 to vector<1x8xf32>
    %208 = arith.mulf %207, %0 : vector<1x8xf32>
    %209 = arith.addf %205, %208 : vector<1x8xf32>
    %c9_22 = arith.constant 9 : index
    %210 = memref.load %arg1[%c9_22] : memref<64xf32, #tpu.memory_space<smem>>
    %211 = vector.broadcast %210 : f32 to vector<1x8xf32>
    %212 = arith.mulf %211, %1 : vector<1x8xf32>
    %213 = arith.addf %209, %212 : vector<1x8xf32>
    %c14 = arith.constant 14 : index
    %214 = memref.load %arg1[%c14] : memref<64xf32, #tpu.memory_space<smem>>
    %215 = vector.broadcast %214 : f32 to vector<1x8xf32>
    %216 = arith.mulf %215, %2 : vector<1x8xf32>
    %217 = arith.addf %213, %216 : vector<1x8xf32>
    %c19 = arith.constant 19 : index
    %218 = memref.load %arg1[%c19] : memref<64xf32, #tpu.memory_space<smem>>
    %219 = vector.broadcast %218 : f32 to vector<1x8xf32>
    %220 = arith.mulf %219, %3 : vector<1x8xf32>
    %221 = arith.addf %217, %220 : vector<1x8xf32>
    %c24 = arith.constant 24 : index
    %222 = memref.load %arg1[%c24] : memref<64xf32, #tpu.memory_space<smem>>
    %223 = vector.broadcast %222 : f32 to vector<1x8xf32>
    %224 = arith.mulf %223, %4 : vector<1x8xf32>
    %225 = arith.addf %221, %224 : vector<1x8xf32>
    %c29 = arith.constant 29 : index
    %226 = memref.load %arg1[%c29] : memref<64xf32, #tpu.memory_space<smem>>
    %227 = vector.broadcast %226 : f32 to vector<1x8xf32>
    %228 = arith.mulf %227, %5 : vector<1x8xf32>
    %229 = arith.addf %225, %228 : vector<1x8xf32>
    %c34 = arith.constant 34 : index
    %230 = memref.load %arg1[%c34] : memref<64xf32, #tpu.memory_space<smem>>
    %231 = vector.broadcast %230 : f32 to vector<1x8xf32>
    %232 = arith.mulf %231, %6 : vector<1x8xf32>
    %233 = arith.addf %229, %232 : vector<1x8xf32>
    %c39 = arith.constant 39 : index
    %234 = memref.load %arg1[%c39] : memref<64xf32, #tpu.memory_space<smem>>
    %235 = vector.broadcast %234 : f32 to vector<1x8xf32>
    %236 = arith.mulf %235, %7 : vector<1x8xf32>
    %237 = arith.addf %233, %236 : vector<1x8xf32>
    %c44 = arith.constant 44 : index
    %238 = memref.load %arg1[%c44] : memref<64xf32, #tpu.memory_space<smem>>
    %239 = vector.broadcast %238 : f32 to vector<1x8xf32>
    %240 = arith.mulf %239, %8 : vector<1x8xf32>
    %241 = arith.addf %237, %240 : vector<1x8xf32>
    %c49 = arith.constant 49 : index
    %242 = memref.load %arg1[%c49] : memref<64xf32, #tpu.memory_space<smem>>
    %243 = vector.broadcast %242 : f32 to vector<1x8xf32>
    %244 = arith.mulf %243, %9 : vector<1x8xf32>
    %245 = arith.addf %241, %244 : vector<1x8xf32>
    %c59 = arith.constant 59 : index
    %246 = memref.load %arg1[%c59] : memref<64xf32, #tpu.memory_space<smem>>
    %cst_23 = arith.constant 0.000000e+00 : f32
    %247 = vector.broadcast %cst_23 : f32 to vector<1x8xf32>
    %248 = arith.maximumf %245, %247 : vector<1x8xf32>
    %249 = vector.broadcast %246 : f32 to vector<1x8xf32>
    %250 = arith.mulf %249, %248 : vector<1x8xf32>
    %251 = arith.addf %203, %250 : vector<1x8xf32>
    %c0_24 = arith.constant 0 : index
    %c0_25 = arith.constant 0 : index
    %252 = vector.load %arg3[%c0_24, %c0_25] : memref<1x8xf32, #tpu.memory_space<vmem>>, vector<1x8xf32>
    tpu.vector_store %arg3[%c0_24, %c0_25], %251 {strides = array<i32>} : memref<1x8xf32, #tpu.memory_space<vmem>>, vector<1x8xf32>,
    return
  }
  func.func @transform_0(%arg0: i32) -> i32 {
    %c0_i32 = arith.constant 0 : i32
    %c0_i32_0 = arith.constant 0 : i32
    return %c0_i32 : i32
  }
  func.func @transform_1(%arg0: i32) -> (i32, i32) {
    %c0_i32 = arith.constant 0 : i32
    %c0_i32_0 = arith.constant 0 : i32
    return %c0_i32, %arg0 : i32, i32
  }
  func.func @transform_2(%arg0: i32) -> (i32, i32) {
    %c0_i32 = arith.constant 0 : i32
    %c0_i32_0 = arith.constant 0 : i32
    return %c0_i32, %arg0 : i32, i32
  }
}

</mosaic_0001>

<bundles_post_ra>
// kernel: tpu_custom_call.1
= control target key start
LH: loop header
LB: loop body
LE: loop exit
PB: predicated region body
PF: predicated region fallthrough
CT: control target
= control target key end

     0   :  { %7 = vsyncpa [#allocation4], 0  ;;  %s648_s0 = inlined_call_operand.vmem [shape: f32[64], index: 0, kind: input, shape index: {}]   ;;  %s649_s1 = inlined_call_operand.vmem [shape: f32[10,8], index: 1, kind: input, shape index: {}]   ;;  %s650_s2 = inlined_call_operand.hbm [shape: f32[1,8], index: 2, kind: output, shape index: {}]  }
   0x1   :  { %8 = vsyncpa [#allocation3], 0  ;;  %s14_s11 = sshll.u32 %s648_s0, 4  ;;  %s393_s12 = smov [#allocation2]   ;;  %s15_s11 = int_to_ptr.vmem [resolvable:$true] %s14_s11 }
   0x2   :  { %17 = dma.vmem_to_smem %s15_s11, 16, %s393_s12, [#allocation4]  }
   0x3   :  { %389 = dma.done.wait [#allocation4], 16  }
   0x4   :  { %390 = vsyncadd [#allocation4], 4294967280 }
   0x5   :  { %24 = sfence }
   0x6   :  { %s39_s13 = sld [smem:[#allocation2]]  ;;  %v420_v0 = vld [vmem:[%s649_s1] sm:$0x1]  ;;  %v434_v3 = vld [vmem:[%s649_s1 + $0x1] sm:$0x1]  ;;  %vm272_vm0 = vcmask 57344  }
   0x7   :  { %s292_s14 = sld [smem:[#allocation2 + $0x32]]  ;;  %v442_v8 = vld [vmem:[%s649_s1 + $0x2] sm:$0x1]  ;;  %v454_v12 = vld [vmem:[%s649_s1 + $0x3] sm:$0x1] }
   0x8   :  { %s293_s15 = sld [smem:[#allocation2 + $0x5]]  ;;  %v471_v23 = vld [vmem:[%s649_s1 + $0x4] sm:$0x1]  ;;  %v484_v30 = vld [vmem:[%s649_s1 + $0x5] sm:$0x1] }
   0x9   :  { %s413_s16 = sld [smem:[#allocation2 + $0x3c]]  ;;  %v496_v35 = vld [vmem:[%s649_s1 + $0x6] sm:$0x1]  ;;  %v517_v49 = vld [vmem:[%s649_s1 + $0x7] sm:$0x1] }
   0xa   :  { %s294_s17 = sld [smem:[#allocation2 + $0xa]] }
   0xb   :  { %s415_s18 = sld [smem:[#allocation2 + $0xf]] }
   0xc   :  { %v40_v1 = vstv %s39_s13  ;;  %s422_s0 = sld [smem:[#allocation2 + $0x14]] }
   0xd   :  { %s424_s21 = sld [smem:[#allocation2 + $0x19]]  ;;  %v41_v2 = vmul.f32 %v40_v1, %v420_v0  ;;  %v38_v4 = vstv %s292_s14 }
   0xe   :  { %s426_s22 = sld [smem:[#allocation2 + $0x1e]]  ;;  %v44_v5 = vstv %s293_s15 }
   0xf   :  { %s429_s23 = sld [smem:[#allocation2 + $0x23]]  ;;  %v42_v6 = vadd.f32 %v41_v2, %v38_v4  ;;  %v45_v7 = vmul.f32 %v44_v5, %v434_v3  ;;  %v540_v4 = vld [vmem:[%s649_s1 + $0x8] sm:$0x1] }
  0x10   :  { %s436_s26 = sld [smem:[#allocation2 + $0x28]]  ;;  %v48_v9 = vstv %s294_s17 }
  0x11   :  { %s303_s27 = sld [smem:[#allocation2 + $0x33]]  ;;  %v46_v10 = vadd.f32 %v45_v7, %v42_v6  ;;  %v49_v11 = vmul.f32 %v48_v9, %v442_v8  ;;  %v52_v13 = vstv %s415_s18 }
  0x12   :  { %s304_s28 = sld [smem:[#allocation2 + $0x1]]  ;;  %v53_v21 = vmul.f32 %v52_v13, %v454_v12  ;;  %v56_v24 = vstv %s422_s0 }
  0x13   :  { %s305_s29 = sld [smem:[#allocation2 + $0x6]]  ;;  %v50_v20 = vadd.f32 %v49_v11, %v46_v10  ;;  %v57_v29 = vmul.f32 %v56_v24, %v471_v23  ;;  %v60_v31 = vstv %s424_s21  ;;  %v552_v11 = vld [vmem:[%s649_s1 + $0x9] sm:$0x1] }
  0x14   :  { %s306_s4 = sld [smem:[#allocation2 + $0xb]]  ;;  %v61_v37 = vmul.f32 %v60_v31, %v484_v30  ;;  %v64_v38 = vstv %s426_s22 }
  0x15   :  { %s444_s5 = sld [smem:[#allocation2 + $0x10]]  ;;  %v54_v28 = vadd.f32 %v53_v21, %v50_v20  ;;  %v65_v46 = vmul.f32 %v64_v38, %v496_v35  ;;  %v68_v51 = vstv %s429_s23 }
  0x16   :  { %s446_s6 = sld [smem:[#allocation2 + $0x2d]]  ;;  %v69_v61 = vmul.f32 %v68_v51, %v517_v49  ;;  %v72_v5 = vstv %s436_s26 }
  0x17   :  { %s449_s7 = sld [smem:[#allocation2 + $0x37]]  ;;  %v85_v14 = vstv %s303_s27  ;;  %v58_v36 = vadd.f32 %v57_v29, %v54_v28 }
  0x18   :  { %v87_v15 = vstv %s304_s28  ;;  %s457_s10 = sld [smem:[#allocation2 + $0x15]] }
  0x19   :  { %v88_v16 = vmul.f32 %v87_v15, %v420_v0  ;;  %v91_v17 = vstv %s305_s29  ;;  %s460_s11 = sld [smem:[#allocation2 + $0x1a]]  ;;  %v62_v50 = vadd.f32 %v61_v37, %v58_v36 }
  0x1a   :  { %v92_v18 = vmul.f32 %v91_v17, %v434_v3  ;;  %v95_v19 = vstv %s306_s4  ;;  %s463_s12 = sld [smem:[#allocation2 + $0x1f]] }
  0x1b   :  { %v89_v22 = vadd.f32 %v88_v16, %v85_v14  ;;  %s466_s13 = sld [smem:[#allocation2 + $0x24]]  ;;  %v96_v25 = vmul.f32 %v95_v19, %v442_v8  ;;  %v99_v27 = vstv %s444_s5  ;;  %v66_v62 = vadd.f32 %v65_v46, %v62_v50 }
  0x1c   :  { %s475_s17 = sld [smem:[#allocation2 + $0x29]]  ;;  %v100_v33 = vmul.f32 %v99_v27, %v454_v12  ;;  %v76_v13 = vstv %s446_s6  ;;  %v73_v16 = vmul.f32 %v72_v5, %v540_v4 }
  0x1d   :  { %v93_v26 = vadd.f32 %v92_v18, %v89_v22  ;;  %s478_s18 = sld [smem:[#allocation2 + $0x34]]  ;;  %v70_v15 = vadd.f32 %v69_v61, %v66_v62  ;;  %v77_v24 = vmul.f32 %v76_v13, %v552_v11 }
  0x1e   :  { %s316_s19 = sld [smem:[#allocation2 + $0x2]]  ;;  %v103_v34 = vstv %s457_s10 }
  0x1f   :  { %s317_s20 = sld [smem:[#allocation2 + $0x7]]  ;;  %v97_v32 = vadd.f32 %v96_v25, %v93_v26  ;;  %v104_v40 = vmul.f32 %v103_v34, %v471_v23  ;;  %v107_v43 = vstv %s460_s11 }
  0x20   :  { %s318_s0 = sld [smem:[#allocation2 + $0xc]]  ;;  %v108_v55 = vmul.f32 %v107_v43, %v484_v30  ;;  %v111_v58 = vstv %s463_s12 }
  0x21   :  { %s489_s27 = sld [smem:[#allocation2 + $0x11]]  ;;  %v101_v39 = vadd.f32 %v100_v33, %v97_v32  ;;  %v112_v7 = vmul.f32 %v111_v58, %v496_v35  ;;  %v115_v9 = vstv %s466_s13  ;;  %v74_v33 = vadd.f32 %v73_v16, %v70_v15 }
  0x22   :  { %s491_s28 = sld [smem:[#allocation2 + $0x16]]  ;;  %v116_v20 = vmul.f32 %v115_v9, %v517_v49  ;;  %v119_v25 = vstv %s475_s17  ;;  %v81_v58 = vstv %s449_s7 }
  0x23   :  { %s500_s21 = sld [smem:[#allocation2 + $0x1b]]  ;;  %v132_v41 = vstv %s478_s18  ;;  %v105_v54 = vadd.f32 %v104_v40, %v101_v39  ;;  %v120_v39 = vmul.f32 %v119_v25, %v540_v4  ;;  %s281_s18 = sshll.u32 %s650_s2, 4  ;;  %s282_s18 = int_to_ptr.hbm [resolvable:$true] %s281_s18 }
  0x24   :  { %s503_s3 = sld [smem:[#allocation2 + $0x2e]]  ;;  %v134_v42 = vstv %s316_s19 }
  0x25   :  { %s507_s4 = sld [smem:[#allocation2 + $0x38]]  ;;  %v135_v44 = vmul.f32 %v134_v42, %v420_v0  ;;  %v138_v45 = vstv %s317_s20  ;;  %v109_v6 = vadd.f32 %v108_v55, %v105_v54 }
  0x26   :  { %v139_v47 = vmul.f32 %v138_v45, %v434_v3  ;;  %v142_v48 = vstv %s318_s0  ;;  %s512_s22 = sld [smem:[#allocation2 + $0x20]] }
  0x27   :  { %v136_v52 = vadd.f32 %v135_v44, %v132_v41  ;;  %v143_v53 = vmul.f32 %v142_v48, %v442_v8  ;;  %s521_s9 = sld [smem:[#allocation2 + $0x25]]  ;;  %v146_v56 = vstv %s489_s27  ;;  %v113_v19 = vadd.f32 %v112_v7, %v109_v6 }
  0x28   :  { %v150_v57 = vstv %s491_s28  ;;  %s526_s10 = sld [smem:[#allocation2 + $0x2a]]  ;;  %v147_v60 = vmul.f32 %v146_v56, %v454_v12  ;;  %v78_v48 = vadd.f32 %v77_v24, %v74_v33 }
  0x29   :  { %v140_v59 = vadd.f32 %v139_v47, %v136_v52  ;;  %s530_s23 = sld [smem:[#allocation2 + $0x35]]  ;;  %v151_v1 = vmul.f32 %v150_v57, %v471_v23  ;;  %v154_v2 = vstv %s500_s21  ;;  %v117_v38 = vadd.f32 %v116_v20, %v113_v19 }
  0x2a   :  { %s533_s11 = sld [smem:[#allocation2 + $0x3]]  ;;  %v155_v14 = vmul.f32 %v154_v2, %v484_v30  ;;  %v123_v42 = vstv %s503_s3  ;;  %v80_v62 = vmax.f32 %v78_v48, 0.0 }
  0x2b   :  { %v144_v63 = vadd.f32 %v143_v53, %v140_v59  ;;  %s329_s14 = sld [smem:[#allocation2 + $0x8]]  ;;  %v121_v53 = vadd.f32 %v120_v39, %v117_v38  ;;  %v124_v54 = vmul.f32 %v123_v42, %v552_v11 }
  0x2c   :  { %s544_s12 = sld [smem:[#allocation2 + $0xd]]  ;;  %v158_v18 = vstv %s512_s22 }
  0x2d   :  { %v148_v10 = vadd.f32 %v147_v60, %v144_v63  ;;  %s547_s19 = sld [smem:[#allocation2 + $0x12]]  ;;  %v159_v29 = vmul.f32 %v158_v18, %v496_v35  ;;  %v162_v34 = vstv %s521_s9  ;;  %v125_v5 = vadd.f32 %v124_v54, %v121_v53 }
  0x2e   :  { %s556_s26 = sld [smem:[#allocation2 + $0x17]]  ;;  %v163_v46 = vmul.f32 %v162_v34, %v517_v49  ;;  %v166_v50 = vstv %s526_s10 }
  0x2f   :  { %v152_v17 = vadd.f32 %v151_v1, %v148_v10  ;;  %s560_s13 = sld [smem:[#allocation2 + $0x1c]]  ;;  %v179_v21 = vstv %s530_s23  ;;  %v167_v60 = vmul.f32 %v166_v50, %v540_v4  ;;  %v127_v33 = vmax.f32 %v125_v5, 0.0  ;;  %s394_s23 = smov [#allocation5]  }
  0x30   :  { %v181_v22 = vstv %s533_s11  ;;  %s565_s1 = sld [smem:[#allocation2 + $0x21]]  ;;  %s279_s11 = sshll.u32 %s394_s23, 4  ;;  %s280_s11 = int_to_ptr.vmem [resolvable:$true] %s279_s11 }
  0x31   :  { %s569_s6 = sld [smem:[#allocation2 + $0x2f]]  ;;  %v182_v26 = vmul.f32 %v181_v22, %v420_v0  ;;  %v185_v27 = vstv %s329_s14  ;;  %v156_v28 = vadd.f32 %v155_v14, %v152_v17 }
  0x32   :  { %v186_v31 = vmul.f32 %v185_v27, %v434_v3  ;;  %v189_v32 = vstv %s544_s12  ;;  %s575_s25 = sld [smem:[#allocation2 + $0x26]] }
  0x33   :  { %v183_v36 = vadd.f32 %v182_v26, %v179_v21  ;;  %v190_v37 = vmul.f32 %v189_v32, %v442_v8  ;;  %s579_s17 = sld [smem:[#allocation2 + $0x2b]]  ;;  %v193_v40 = vstv %s547_s19  ;;  %v160_v45 = vadd.f32 %v159_v29, %v156_v28 }
  0x34   :  { %v197_v41 = vstv %s556_s26  ;;  %s584_s0 = sld [smem:[#allocation2 + $0x30]]  ;;  %v194_v44 = vmul.f32 %v193_v40, %v454_v12  ;;  %v82_v32 = vmul.f32 %v81_v58, %v80_v62 }
  0x35   :  { %v187_v43 = vadd.f32 %v186_v31, %v183_v36  ;;  %s588_s27 = sld [smem:[#allocation2 + $0x36]]  ;;  %v201_v47 = vstv %s560_s13  ;;  %v198_v52 = vmul.f32 %v197_v41, %v471_v23  ;;  %v164_v59 = vadd.f32 %v163_v46, %v160_v45 }
  0x36   :  { %s340_s28 = sld [smem:[#allocation2 + $0x4]]  ;;  %v205_v55 = vstv %s565_s1  ;;  %v202_v57 = vmul.f32 %v201_v47, %v484_v30 }
  0x37   :  { %v191_v51 = vadd.f32 %v190_v37, %v187_v43  ;;  %s341_s29 = sld [smem:[#allocation2 + $0x9]]  ;;  %v170_v63 = vstv %s569_s6  ;;  %v206_v2 = vmul.f32 %v205_v55, %v496_v35  ;;  %v168_v16 = vadd.f32 %v167_v60, %v164_v59 }
  0x38   :  { %s596_s30 = sld [smem:[#allocation2 + $0xe]]  ;;  %v209_v61 = vstv %s575_s25  ;;  %v171_v17 = vmul.f32 %v170_v63, %v552_v11 }
  0x39   :  { %v195_v56 = vadd.f32 %v194_v44, %v191_v51  ;;  %s599_s21 = sld [smem:[#allocation2 + $0x13]]  ;;  %v213_v6 = vstv %s579_s17  ;;  %v210_v13 = vmul.f32 %v209_v61, %v517_v49 }
  0x3a   :  { %s604_s3 = sld [smem:[#allocation2 + $0x18]]  ;;  %v214_v21 = vmul.f32 %v213_v6, %v540_v4  ;;  %v217_v25 = vstv %s584_s0  ;;  %v172_v34 = vadd.f32 %v171_v17, %v168_v16 }
  0x3b   :  { %v199_v1 = vadd.f32 %v198_v52, %v195_v56  ;;  %s608_s22 = sld [smem:[#allocation2 + $0x1d]]  ;;  %v226_v7 = vstv %s588_s27  ;;  %v218_v37 = vmul.f32 %v217_v25, %v552_v11 }
  0x3c   :  { %v228_v9 = vstv %s340_s28  ;;  %s612_s7 = sld [smem:[#allocation2 + $0x22]]  ;;  %v174_v45 = vmax.f32 %v172_v34, 0.0 }
  0x3d   :  { %v203_v10 = vadd.f32 %v202_v57, %v199_v1  ;;  %v229_v14 = vmul.f32 %v228_v9, %v420_v0  ;;  %v232_v15 = vstv %s341_s29  ;;  %s619_s5 = sld [smem:[#allocation2 + $0x27]]  ;;  %v36_v0 = vstv %s413_s16 }
  0x3e   :  { %v233_v18 = vmul.f32 %v232_v15, %v434_v3  ;;  %v236_v19 = vstv %s596_s30  ;;  %s621_s8 = sld [smem:[#allocation2 + $0x39]]  ;;  %v128_v3 = vstv %s507_s4 }
  0x3f   :  { %v207_v20 = vadd.f32 %v206_v2, %v203_v10  ;;  %v230_v22 = vadd.f32 %v229_v14, %v226_v7  ;;  %v237_v24 = vmul.f32 %v236_v19, %v442_v8  ;;  %v240_v26 = vstv %s599_s21  ;;  %s629_s9 = sld [smem:[#allocation2 + $0x2c]] }
  0x40   :  { %v244_v27 = vstv %s604_s3  ;;  %v241_v31 = vmul.f32 %v240_v26, %v454_v12  ;;  %s349_s10 = sld [smem:[#allocation2 + $0x31]]  ;;  %v83_v12 = vadd.f32 %v82_v32, %v36_v0  ;;  %v129_v43 = vmul.f32 %v128_v3, %v127_v33 }
  0x41   :  { %v211_v28 = vadd.f32 %v210_v13, %v207_v20  ;;  %v234_v29 = vadd.f32 %v233_v18, %v230_v22  ;;  %v248_v36 = vstv %s608_s22  ;;  %v245_v39 = vmul.f32 %v244_v27, %v471_v23  ;;  %s338_s16 = sld [smem:[#allocation2 + $0x3a]] }
  0x42   :  { %v252_v40 = vstv %s612_s7  ;;  %v249_v42 = vmul.f32 %v248_v36, %v484_v30  ;;  %v130_v54 = vadd.f32 %v129_v43, %v83_v12  ;;  %s350_s4 = sld [smem:[#allocation2 + $0x3b]] }
  0x43   :  { %v215_v8 = vadd.f32 %v214_v21, %v211_v28  ;;  %v238_v38 = vadd.f32 %v237_v24, %v234_v29  ;;  %v256_v44 = vstv %s619_s5  ;;  %v253_v48 = vmul.f32 %v252_v40, %v496_v35 }
  0x44   :  { %v175_v50 = vstv %s621_s8  ;;  %v257_v53 = vmul.f32 %v256_v44, %v517_v49 }
  0x45   :  { %v242_v41 = vadd.f32 %v241_v31, %v238_v38  ;;  %v219_v46 = vadd.f32 %v218_v37, %v215_v8  ;;  %v260_v51 = vstv %s629_s9  ;;  %v176_v55 = vmul.f32 %v175_v50, %v174_v45 }
  0x46   :  { %v264_v23 = vstv %s349_s10  ;;  %v261_v30 = vmul.f32 %v260_v51, %v540_v4 }
  0x47   :  { %v246_v47 = vadd.f32 %v245_v39, %v242_v41  ;;  %v221_v56 = vmax.f32 %v219_v46, 0.0  ;;  %v222_v58 = vstv %s338_s16  ;;  %v265_v60 = vmul.f32 %v264_v23, %v552_v11 }
  0x48   :  { %v177_v61 = vadd.f32 %v176_v55, %v130_v54  ;;  %v269_v1 = vstv %s350_s4 }
  0x49   :  { %v250_v52 = vadd.f32 %v249_v42, %v246_v47  ;;  %v223_v62 = vmul.f32 %v222_v58, %v221_v56 }
  0x4b   :  { %v254_v57 = vadd.f32 %v253_v48, %v250_v52  ;;  %v224_v2 = vadd.f32 %v223_v62, %v177_v61 }
  0x4d   :  { %v258_v59 = vadd.f32 %v257_v53, %v254_v57 }
  0x4f   :  { %v262_v35 = vadd.f32 %v261_v30, %v258_v59 }
  0x51   :  { %v266_v63 = vadd.f32 %v265_v60, %v262_v35 }
  0x53   :  { %v268_v5 = vmax.f32 %v266_v63, 0.0 }
  0x55   :  { %v270_v49 = vmul.f32 %v269_v1, %v268_v5 }
  0x57   :  { %v271_v4 = vadd.f32 %v270_v49, %v224_v2 }
  0x59   :  { %273 = vst.msk [vmem:[#allocation5] sm:$0x1] %vm272_vm0, %v271_v4 }
  0x5a   :  { %284 = dma.vmem_to_hbm [thread:$0]  %s280_s11, 16, %s282_s18, [#allocation3]  }
  0x5b   :  { %391 = dma.done.wait [#allocation3], 16  }
  0x5c   :  { %392 = vsyncadd [#allocation3], 4294967280 }
  0x5d   :  { %289 = vsyncpa [#allocation3], 1 }
  0x5e   :  { %290 = vsyncpa [#allocation4], 1 }

</bundles_post_ra>
